<compile_context>
chip_gen: v7x
topology: tpu7x:2x2x1
jax: 0.10.0
libtpu: 0.0.40
codegen_flags: <defaults>
</compile_context>

<pallas_src>
import math
from functools import partial

import jax
import jax.numpy as jnp
from jax import lax
from jax.experimental import pallas as pl
from jax.experimental.pallas import tpu as pltpu

_MiB = 1024 * 1024

ACT_DTYPE = jnp.bfloat16           # inter-kernel activation dtype (MXU operands)
WEIGHT_DTYPE = jnp.bfloat16        # weights pre-cast once at init
ATTN_SCORES_DTYPE = jnp.bfloat16   # returned attention scores; set jnp.float32 for
                                   # exact parity with the PyTorch reference.

# --------------------------------------------------------------------------
# Generation-aware tiling / VMEM budget
# --------------------------------------------------------------------------

_HW = None


def _detect_hw():
    vmem_cap = None
    try:
        vmem_cap = int(pltpu.get_tpu_info().vmem_capacity_bytes)
    except Exception:
        vmem_cap = None
    if vmem_cap is None:
        kind = ""
        try:
            kind = jax.devices()[0].device_kind.lower()
        except Exception:
            pass
        vmem_cap = 64 * _MiB if "v7" in kind else 128 * _MiB
    if vmem_cap <= 64 * _MiB:
        # v7x: 64 MiB physical per TensorCore -> leave headroom for Mosaic
        # internal scratch + double buffers; smaller tile targets.
        return {'vmem_limit_bytes': 48 * _MiB, 'm_tile': 256, 'n_tile': 512,
                'f_tile': 1024, 'q_tile': 256}
    # v5e / v6e: 128 MiB physical -> bigger tiles for the mem-bound kernels.
    return {'vmem_limit_bytes': 96 * _MiB, 'm_tile': 512, 'n_tile': 1024,
            'f_tile': 2048, 'q_tile': 512}


def _hw():
    global _HW
    if _HW is None:
        _HW = _detect_hw()
    return _HW


def _pick_tile(dim, target, align):
    """Largest tile <= target that is a multiple of `align` and divides `dim`,
    else the full dim (full-extent blocks are always legal)."""
    if dim <= target:
        return dim
    t = (target // align) * align
    while t >= align:
        if dim % t == 0:
            return t
        t -= align
    return dim


def _choose_tile(dim, target, align):
    """(tile, padded_dim).  Never degenerates to a mega-block: if no divisor
    <= target exists, the dim is padded up to a tile multiple instead."""
    t = _pick_tile(dim, target, align)
    if dim <= target or t != dim:
        return t, dim
    tile = max((target // align) * align, align)
    return tile, ((dim + tile - 1) // tile) * tile


def _pad_rows(x, rows):
    return x if rows == x.shape[0] else jnp.pad(x, ((0, rows - x.shape[0]), (0, 0)))


# --------------------------------------------------------------------------
# Pallas kernels
# --------------------------------------------------------------------------

def _matmul_kernel(x_ref, w_ref, o_ref):
    # o = x @ w   (bf16 MXU operands, f32 accumulation)
    o_ref[...] = jnp.dot(x_ref[...], w_ref[...],
                         preferred_element_type=jnp.float32).astype(o_ref.dtype)


def _matmul_bias_kernel(x_ref, w_ref, b_ref, o_ref):
    acc = jnp.dot(x_ref[...], w_ref[...],
                  preferred_element_type=jnp.float32) + b_ref[...]
    o_ref[...] = acc.astype(o_ref.dtype)


def _proj_add_ln_kernel(ctx_ref, w_ref, res_ref, g_ref, b_ref, o_ref, *, eps):
    # o = LayerNorm(res + ctx @ w) * gamma + beta   (LN stats in f32)
    proj = jnp.dot(ctx_ref[...], w_ref[...], preferred_element_type=jnp.float32)
    z = res_ref[...].astype(jnp.float32) + proj
    mu = jnp.mean(z, axis=-1, keepdims=True)
    var = jnp.mean(jnp.square(z - mu), axis=-1, keepdims=True)
    o_ref[...] = ((z - mu) * lax.rsqrt(var + eps) * g_ref[...]
                  + b_ref[...]).astype(o_ref.dtype)


def _ffn_add_ln_kernel(x_ref, w1_ref, b1_ref, w2_ref, b2_ref, g_ref, be_ref,
                       o_ref, acc_ref, *, eps):
    # F-tiled FFN: acc += relu(x @ w1_f + b1_f) @ w2_f over the fi grid axis;
    # residual + LayerNorm at the last fi step.
    fi = pl.program_id(1)

    @pl.when(fi == 0)
    def _():
        acc_ref[...] = jnp.zeros_like(acc_ref)

    h = jnp.dot(x_ref[...], w1_ref[...],
                preferred_element_type=jnp.float32) + b1_ref[...]
    h = jnp.maximum(h, 0.0)
    acc_ref[...] += jnp.dot(h.astype(jnp.bfloat16), w2_ref[...],
                            preferred_element_type=jnp.float32)

    @pl.when(fi == pl.num_programs(1) - 1)
    def _():
        z = x_ref[...].astype(jnp.float32) + acc_ref[...] + b2_ref[...]
        mu = jnp.mean(z, axis=-1, keepdims=True)
        var = jnp.mean(jnp.square(z - mu), axis=-1, keepdims=True)
        o_ref[...] = ((z - mu) * lax.rsqrt(var + eps) * g_ref[...]
                      + be_ref[...]).astype(o_ref.dtype)


def _attn_kernel(q_ref, k_ref, v_ref, pad_ref, o_ref, s_ref, *,
                 num_heads, head_dim, scale, causal, q_tile):
    # Matches PyTorch: softmax((q k^T + mask * -1e9) / sqrt(Dh)) @ v,
    # with the 1/sqrt(Dh) folded into q and into the mask constant.
    q = q_ref[0] * scale                     # (tq, H*Dh) bf16, scaled once
    k = k_ref[0]                             # (Sk, H*Dh)
    v = v_ref[0]                             # (Sk, H*Dh)
    Sk = k.shape[0]

    pad = pad_ref[0] > 0.5                   # (1, Sk) bool — key padding
    neg_val = jnp.float32(-1e9 * scale)
    if causal:
        q0 = pl.program_id(1) * q_tile
        row = q0 + lax.broadcasted_iota(jnp.int32, (q_tile, Sk), 0)
        col = lax.broadcasted_iota(jnp.int32, (q_tile, Sk), 1)
        masked = jnp.logical_or(pad, col > row)       # (tq, Sk)
    else:
        masked = pad                                   # (1, Sk), broadcasts
    neg = jnp.where(masked, neg_val, jnp.float32(0.0))

    # TODO(synk): could use one batched lax.dot_general over a head axis instead
    # of the static head loop; the direct per-head slice stores already avoid
    # the old concat and keep a lane-dense (tq, D) output block.
    for h in range(num_heads):
        lo = h * head_dim
        qh = q[:, lo:lo + head_dim]
        kh = k[:, lo:lo + head_dim]
        vh = v[:, lo:lo + head_dim]
        logits = lax.dot_general(qh, kh, (((1,), (1,)), ((), ())),
                                 preferred_element_type=jnp.float32)
        logits = logits + neg
        logits = logits - jnp.max(logits, axis=-1, keepdims=True)
        e = jnp.exp(logits)
        p = e / jnp.sum(e, axis=-1, keepdims=True)     # exact normalization
        s_ref[0, h] = p.astype(s_ref.dtype)
        o_ref[0, :, lo:lo + head_dim] = jnp.dot(
            p.astype(jnp.bfloat16), vh,
            preferred_element_type=jnp.float32).astype(o_ref.dtype)


# --------------------------------------------------------------------------
# Pallas wrappers
# --------------------------------------------------------------------------

def dense(x2d, w, b=None, out_dtype=ACT_DTYPE):
    """x2d: (M, K) bf16, w: (K, N) bf16, optional b: (N,) f32 -> (M, N)."""
    hw = _hw()
    M, K = x2d.shape
    N = w.shape[1]
    tm, Mp = _choose_tile(M, hw['m_tile'], 16)    # 16: bf16 sublane packing
    tn, Np = _choose_tile(N, hw['n_tile'], 128)
    xp = _pad_rows(x2d, Mp)
    wp = w if Np == N else jnp.pad(w, ((0, 0), (0, Np - N)))
    grid = (Mp // tm, Np // tn)
    out_bytes = Mp * Np * jnp.dtype(out_dtype).itemsize
    cost = pl.CostEstimate(flops=2 * Mp * K * Np, transcendentals=0,
                           bytes_accessed=2 * Mp * K + 2 * K * Np + out_bytes)
    cparams = pltpu.CompilerParams(
        dimension_semantics=("parallel", "parallel"),
        vmem_limit_bytes=hw['vmem_limit_bytes'])

    if b is None:
        out = pl.pallas_call(
            _matmul_kernel,
            grid=grid,
            in_specs=[
                pl.BlockSpec((tm, K), lambda i, j: (i, 0)),
                pl.BlockSpec((K, tn), lambda i, j: (0, j)),
            ],
            out_specs=pl.BlockSpec((tm, tn), lambda i, j: (i, j)),
            out_shape=jax.ShapeDtypeStruct((Mp, Np), out_dtype),
            compiler_params=cparams,
            cost_estimate=cost,
        )(xp, wp)
    else:
        b2 = b.reshape(1, N).astype(jnp.float32)
        bp = b2 if Np == N else jnp.pad(b2, ((0, 0), (0, Np - N)))
        out = pl.pallas_call(
            _matmul_bias_kernel,
            grid=grid,
            in_specs=[
                pl.BlockSpec((tm, K), lambda i, j: (i, 0)),
                pl.BlockSpec((K, tn), lambda i, j: (0, j)),
                pl.BlockSpec((1, tn), lambda i, j: (0, j)),
            ],
            out_specs=pl.BlockSpec((tm, tn), lambda i, j: (i, j)),
            out_shape=jax.ShapeDtypeStruct((Mp, Np), out_dtype),
            compiler_params=cparams,
            cost_estimate=cost,
        )(xp, wp, bp)

    if Mp != M or Np != N:
        out = out[:M, :N]
    return out


def proj_add_ln(ctx, w, residual, gamma, beta, eps):
    """LayerNorm(residual + ctx @ w); ctx/residual: (B, S, D) bf16 -> bf16."""
    hw = _hw()
    B, S, D = residual.shape
    M = B * S
    tm, Mp = _choose_tile(M, hw['m_tile'], 16)
    out = pl.pallas_call(
        partial(_proj_add_ln_kernel, eps=eps),
        grid=(Mp // tm,),
        in_specs=[
            pl.BlockSpec((tm, D), lambda i: (i, 0)),
            pl.BlockSpec((D, D), lambda i: (0, 0)),
            pl.BlockSpec((tm, D), lambda i: (i, 0)),
            pl.BlockSpec((1, D), lambda i: (0, 0)),
            pl.BlockSpec((1, D), lambda i: (0, 0)),
        ],
        out_specs=pl.BlockSpec((tm, D), lambda i: (i, 0)),
        out_shape=jax.ShapeDtypeStruct((Mp, D), ACT_DTYPE),
        compiler_params=pltpu.CompilerParams(
            dimension_semantics=("parallel",),
            vmem_limit_bytes=hw['vmem_limit_bytes']),
    )(_pad_rows(ctx.reshape(M, D), Mp), w,
      _pad_rows(residual.reshape(M, D), Mp),
      gamma.reshape(1, D), beta.reshape(1, D))
    if Mp != M:
        out = out[:M]
    return out.reshape(B, S, D)


def ffn_add_ln(x, pf, ln, eps):
    """LayerNorm(x + MLP(x)); x: (B, S, D) bf16 -> bf16.  F-tiled accumulation."""
    hw = _hw()
    B, S, D = x.shape
    F_ = pf['w1'].shape[1]
    M = B * S
    tm, Mp = _choose_tile(M, hw['m_tile'], 16)
    tf, Fp = _choose_tile(F_, hw['f_tile'], 128)
    w1, b1, w2 = pf['w1'], pf['b1'].reshape(1, F_), pf['w2']
    if Fp != F_:
        w1 = jnp.pad(w1, ((0, 0), (0, Fp - F_)))
        b1 = jnp.pad(b1, ((0, 0), (0, Fp - F_)))
        w2 = jnp.pad(w2, ((0, Fp - F_), (0, 0)))
    out = pl.pallas_call(
        partial(_ffn_add_ln_kernel, eps=eps),
        grid=(Mp // tm, Fp // tf),            # reduction axis (F) is innermost
        in_specs=[
            pl.BlockSpec((tm, D), lambda i, fi: (i, 0)),
            pl.BlockSpec((D, tf), lambda i, fi: (0, fi)),
            pl.BlockSpec((1, tf), lambda i, fi: (0, fi)),
            pl.BlockSpec((tf, D), lambda i, fi: (fi, 0)),
            pl.BlockSpec((1, D), lambda i, fi: (0, 0)),
            pl.BlockSpec((1, D), lambda i, fi: (0, 0)),
            pl.BlockSpec((1, D), lambda i, fi: (0, 0)),
        ],
        out_specs=pl.BlockSpec((tm, D), lambda i, fi: (i, 0)),
        out_shape=jax.ShapeDtypeStruct((Mp, D), ACT_DTYPE),
        scratch_shapes=[pltpu.VMEM((tm, D), jnp.float32)],
        compiler_params=pltpu.CompilerParams(
            dimension_semantics=("parallel", "arbitrary"),
            vmem_limit_bytes=hw['vmem_limit_bytes']),
    )(_pad_rows(x.reshape(M, D), Mp), w1, b1, w2,
      pf['b2'].reshape(1, D), ln['g'].reshape(1, D), ln['b'].reshape(1, D))
    if Mp != M:
        out = out[:M]
    return out.reshape(B, S, D)


def attention_core(q, k, v, key_pad_mask, num_heads, causal):
    """q: (B,Sq,D), k/v: (B,Sk,D) bf16 head-interleaved, key_pad_mask: (B,1,Sk)
    f32 (1.0 = PAD key).  Returns (context (B,Sq,D) bf16, scores (B,H,Sq,Sk))."""
    hw = _hw()
    B, Sq, D = q.shape
    Sk = k.shape[1]
    Dh = D // num_heads
    scale = 1.0 / math.sqrt(Dh)
    tq = _pick_tile(Sq, hw['q_tile'], 8)      # Sq-tile restores pipelining depth
    grid = (B, Sq // tq)
    out, scores = pl.pallas_call(
        partial(_attn_kernel, num_heads=num_heads, head_dim=Dh, scale=scale,
                causal=causal, q_tile=tq),
        grid=grid,
        in_specs=[
            pl.BlockSpec((1, tq, D), lambda b, qi: (b, qi, 0)),
            pl.BlockSpec((1, Sk, D), lambda b, qi: (b, 0, 0)),
            pl.BlockSpec((1, Sk, D), lambda b, qi: (b, 0, 0)),
            pl.BlockSpec((1, 1, Sk), lambda b, qi: (b, 0, 0)),
        ],
        out_specs=(
            pl.BlockSpec((1, tq, D), lambda b, qi: (b, qi, 0)),
            pl.BlockSpec((1, num_heads, tq, Sk), lambda b, qi: (b, 0, qi, 0)),
        ),
        out_shape=(
            jax.ShapeDtypeStruct((B, Sq, D), ACT_DTYPE),
            jax.ShapeDtypeStruct((B, num_heads, Sq, Sk), ATTN_SCORES_DTYPE),
        ),
        compiler_params=pltpu.CompilerParams(
            dimension_semantics=("parallel", "parallel"),
            vmem_limit_bytes=hw['vmem_limit_bytes']),
    )(q, k, v, key_pad_mask)
    return out, scores


# --------------------------------------------------------------------------
# Model (plain-JAX orchestration over Pallas kernels)
# --------------------------------------------------------------------------

def multi_head_attention(x_q, x_kv, p, key_pad_mask, causal, num_heads, ln, eps):
    """Returns (LayerNorm(x_q + Wo(attention)), attention scores)."""
    B, Sq, D = x_q.shape
    if x_kv is x_q:
        # fused QKV projection: one (D, 3D) matmul
        qkv = dense(x_q.reshape(B * Sq, D), p['wqkv'])            # (M, 3D) bf16
        q = qkv[:, :D].reshape(B, Sq, D)
        k = qkv[:, D:2 * D].reshape(B, Sq, D)
        v = qkv[:, 2 * D:].reshape(B, Sq, D)
    else:
        # cross-attention: pre-split Wq / fused Wkv (no per-forward weight slicing)
        Sk = x_kv.shape[1]
        q = dense(x_q.reshape(B * Sq, D), p['wq']).reshape(B, Sq, D)
        kv = dense(x_kv.reshape(B * Sk, D), p['wkv'])             # (M, 2D)
        k = kv[:, :D].reshape(B, Sk, D)
        v = kv[:, D:].reshape(B, Sk, D)
    ctx, scores = attention_core(q, k, v, key_pad_mask, num_heads, causal)
    # fused: output projection Wo + residual add + LayerNorm
    out = proj_add_ln(ctx, p['wo'], x_q, ln['g'], ln['b'], eps)
    return out, scores


def transformer_block(x, p, cfg, self_pad_mask, self_causal,
                      encoder_outputs=None, cross_pad_mask=None):
    H = cfg['num_heads']
    eps = cfg['layer_norm_eps']
    # self attention (dropout = identity in eval)
    x, sa_scores = multi_head_attention(x, x, p['self_attn'], self_pad_mask,
                                        self_causal, H, p['self_ln'], eps)
    ca_scores = None
    if encoder_outputs is not None:
        x, ca_scores = multi_head_attention(x, encoder_outputs, p['cross_attn'],
                                            cross_pad_mask, False, H,
                                            p['cross_ln'], eps)
    x = ffn_add_ln(x, p['ffn'], p['ffn_ln'], eps)
    return x, sa_scores, ca_scores


def embed(ids, emb_params):
    # word embedding gather + sinusoidal positional embedding (glue, not hot path)
    we = emb_params['word'][ids]                      # (B, S, D) f32
    pe = emb_params['pos'][: ids.shape[1]]            # (S, D)
    return (we + pe[None, :, :]).astype(ACT_DTYPE)    # dropout = identity (eval)


def transformer_forward(params, cfg, encoder_inputs, decoder_inputs):
    pad = cfg['pad_idx']
    B, Se = encoder_inputs.shape
    _, Sd = decoder_inputs.shape

    # only (B, 1, Sk) key-pad masks go to HBM; the causal triangle is built in-kernel
    enc_pad_mask = (encoder_inputs == pad).astype(jnp.float32).reshape(B, 1, Se)
    dec_pad_mask = (decoder_inputs == pad).astype(jnp.float32).reshape(B, 1, Sd)

    # encoder
    enc_h = embed(encoder_inputs, params['src_embedding'])
    enc_attn_scores = []
    for lp in params['encoder']:
        enc_h, sa, _ = transformer_block(enc_h, lp, cfg, enc_pad_mask, False)
        enc_attn_scores.append(sa)

    # decoder (causal self-attention + cross-attention over encoder keys)
    dec_h = embed(decoder_inputs, params['trg_embedding'])
    dec_self_scores, dec_cross_scores = [], []
    for lp in params['decoder']:
        dec_h, sa, ca = transformer_block(dec_h, lp, cfg, dec_pad_mask, True,
                                          encoder_outputs=enc_h,
                                          cross_pad_mask=enc_pad_mask)
        dec_self_scores.append(sa)
        dec_cross_scores.append(ca)

    # output projection (M/N-tiled over the vocab axis), logits in f32
    D = cfg['d_model']
    logits = dense(dec_h.reshape(B * Sd, D), params['linear']['w'],
                   params['linear']['b'],
                   out_dtype=jnp.float32).reshape(B, Sd, cfg['vocab_size'])

    return {
        'logits': logits,
        'encoder_last_hidden_states': enc_h.astype(jnp.float32),
        'encoder_attn_scores': enc_attn_scores,
        'decoder_last_hidden_states': dec_h.astype(jnp.float32),
        'decoder_self_attn_scores': dec_self_scores,
        'decoder_cross_attn_scores': dec_cross_scores,
    }


# --------------------------------------------------------------------------
# Deterministic parameter initialization (xavier-uniform, mirrors _init_weights)
# --------------------------------------------------------------------------

def _xavier(key, shape):
    fan_in, fan_out = shape[0], shape[1]
    a = math.sqrt(6.0 / (fan_in + fan_out))
    return jax.random.uniform(key, shape, jnp.float32, -a, a)


def _sinusoidal_pe(max_length, d):
    pos = jnp.arange(max_length, dtype=jnp.float32)[:, None]
    div = jnp.exp(jnp.arange(0, d, 2, dtype=jnp.float32) * (-math.log(10000.0) / d))
    pe = jnp.zeros((max_length, d), jnp.float32)
    pe = pe.at[:, 0::2].set(jnp.sin(pos * div))
    pe = pe.at[:, 1::2].set(jnp.cos(pos * div))
    return pe


def init_params(key, cfg):
    D = cfg['d_model']
    F_ = cfg['dim_feedforward']
    V = cfg['vocab_size']
    keys = iter(jax.random.split(key, 512))

    def self_mha_params():
        # wq | wk | wv fused along the output axis -> (D, 3D), bf16
        wqkv = jnp.concatenate([_xavier(next(keys), (D, D)) for _ in range(3)],
                               axis=1).astype(WEIGHT_DTYPE)
        return {'wqkv': wqkv, 'wo': _xavier(next(keys), (D, D)).astype(WEIGHT_DTYPE)}

    def cross_mha_params():
        # pre-split: Wq (D, D) and fused Wkv (D, 2D)
        wq = _xavier(next(keys), (D, D)).astype(WEIGHT_DTYPE)
        wkv = jnp.concatenate([_xavier(next(keys), (D, D)) for _ in range(2)],
                              axis=1).astype(WEIGHT_DTYPE)
        return {'wq': wq, 'wkv': wkv,
                'wo': _xavier(next(keys), (D, D)).astype(WEIGHT_DTYPE)}

    def ln_params():
        return {'g': jnp.ones((D,), jnp.float32), 'b': jnp.zeros((D,), jnp.float32)}

    def block_params(cross):
        p = {'self_attn': self_mha_params(), 'self_ln': ln_params(),
             'ffn': {'w1': _xavier(next(keys), (D, F_)).astype(WEIGHT_DTYPE),
                     'b1': jnp.zeros((F_,), jnp.float32),
                     'w2': _xavier(next(keys), (F_, D)).astype(WEIGHT_DTYPE),
                     'b2': jnp.zeros((D,), jnp.float32)},
             'ffn_ln': ln_params()}
        if cross:
            p['cross_attn'] = cross_mha_params()
            p['cross_ln'] = ln_params()
        return p

    def emb_params():
        word = _xavier(next(keys), (V, D)).at[cfg['pad_idx']].set(0.0)
        return {'word': word, 'pos': _sinusoidal_pe(cfg['max_length'], D)}

    return {
        'src_embedding': emb_params(),
        'trg_embedding': emb_params(),
        'encoder': [block_params(False) for _ in range(cfg['num_encoder_layers'])],
        'decoder': [block_params(True) for _ in range(cfg['num_decoder_layers'])],
        'linear': {'w': _xavier(next(keys), (D, V)).astype(WEIGHT_DTYPE),
                   'b': jnp.zeros((V,), jnp.float32)},
    }


# --------------------------------------------------------------------------
# main
# --------------------------------------------------------------------------

if __name__ == "__main__":
    cfg = {
        'pad_idx': 0, 'bos_idx': 1, 'eos_idx': 3,
        'vocab_size': 16, 'max_length': 16,
        'd_model': 32, 'dim_feedforward': 64,
        'num_heads': 4, 'num_encoder_layers': 2, 'num_decoder_layers': 2,
        'layer_norm_eps': 1e-6, 'dropout': 0.0,
    }

    key = jax.random.PRNGKey(0)
    k_par, k_enc, k_dec = jax.random.split(key, 3)
    params = init_params(k_par, cfg)

    B, S = 2, 8
    encoder_inputs = jax.random.randint(k_enc, (B, S), 0, cfg['vocab_size'], dtype=jnp.int32)
    decoder_inputs = jax.random.randint(k_dec, (B, S), 0, cfg['vocab_size'], dtype=jnp.int32)
    # put a couple of PAD tokens so masks are exercised
    encoder_inputs = encoder_inputs.at[0, -2:].set(cfg['pad_idx'])
    decoder_inputs = decoder_inputs.at[1, -1:].set(cfg['pad_idx'])

    out = transformer_forward(params, cfg, encoder_inputs, decoder_inputs)
    jax.block_until_ready(out['logits'])
    jax.block_until_ready(out['decoder_last_hidden_states'])

    assert out['logits'].shape == (B, S, cfg['vocab_size'])
    assert out['encoder_last_hidden_states'].shape == (B, S, cfg['d_model'])
    assert len(out['encoder_attn_scores']) == cfg['num_encoder_layers']
    assert len(out['decoder_cross_attn_scores']) == cfg['num_decoder_layers']
    assert out['decoder_cross_attn_scores'][0].shape == (B, cfg['num_heads'], S, S)
    print("KERNEL_OK")
</pallas_src>

<mosaic_0001>
module attributes {stable_mosaic.version = 11 : i64} {
  func.func @_matmul_kernel(%arg0: i32, %arg1: i32, %arg2: memref<16x32xbf16, #tpu.memory_space<vmem>>, %arg3: memref<32x96xbf16, #tpu.memory_space<vmem>>, %arg4: memref<16x96xbf16, #tpu.memory_space<vmem>>) attributes {dimension_semantics = [#tpu.dimension_semantics<parallel>, #tpu.dimension_semantics<parallel>], iteration_bounds = array<i64: 1, 1>, scalar_prefetch = 0 : i64, scratch_operands = 0 : i64, tpu.core_type = #tpu.core_type<tc>, window_params = [{transform_indices = @transform_0, window_bounds = array<i64: 16, 32>}, {transform_indices = @transform_1, window_bounds = array<i64: 32, 96>}, {transform_indices = @transform_2, window_bounds = array<i64: 16, 96>}]} {
    %c0 = arith.constant 0 : index
    %c0_0 = arith.constant 0 : index
    %0 = vector.load %arg2[%c0, %c0_0] : memref<16x32xbf16, #tpu.memory_space<vmem>>, vector<16x32xbf16>
    %c0_1 = arith.constant 0 : index
    %c0_2 = arith.constant 0 : index
    %1 = vector.load %arg3[%c0_1, %c0_2] : memref<32x96xbf16, #tpu.memory_space<vmem>>, vector<32x96xbf16>
    %cst = arith.constant dense<0.000000e+00> : vector<16x96xf32>
    %2 = tpu.matmul %0, %1, %cst {dimension_numbers = #tpu.dot_dimension_numbers<[1], [0], [0], [1], [0, 0, 1, 1], [], []>} : vector<16x32xbf16>, vector<32x96xbf16>, vector<16x96xf32> -> vector<16x96xf32>
    %3 = arith.truncf %2 : vector<16x96xf32> to vector<16x96xbf16>
    %c0_3 = arith.constant 0 : index
    %c0_4 = arith.constant 0 : index
    %4 = vector.load %arg4[%c0_3, %c0_4] : memref<16x96xbf16, #tpu.memory_space<vmem>>, vector<16x96xbf16>
    tpu.vector_store %arg4[%c0_3, %c0_4], %3 {strides = array<i32>} : memref<16x96xbf16, #tpu.memory_space<vmem>>, vector<16x96xbf16>,
    return
  }
  func.func @transform_0(%arg0: i32, %arg1: i32) -> (i32, i32) {
    %c0_i32 = arith.constant 0 : i32
    %c0_i32_0 = arith.constant 0 : i32
    return %arg0, %c0_i32 : i32, i32
  }
  func.func @transform_1(%arg0: i32, %arg1: i32) -> (i32, i32) {
    %c0_i32 = arith.constant 0 : i32
    %c0_i32_0 = arith.constant 0 : i32
    return %c0_i32, %arg1 : i32, i32
  }
  func.func @transform_2(%arg0: i32, %arg1: i32) -> (i32, i32) {
    %c0_i32 = arith.constant 0 : i32
    return %arg0, %arg1 : i32, i32
  }
}

</mosaic_0001>

<bundles_post_ra>
// kernel: tpu_custom_call.1
= control target key start
LH: loop header
LB: loop body
LE: loop exit
PB: predicated region body
PF: predicated region fallthrough
CT: control target
= control target key end

     0   :  { %7 = vsyncpa [#allocation3], 0  ;;  %s306_s0 = inlined_call_operand.hbm [shape: bf16[16,32], index: 0, kind: input, shape index: {}]   ;;  %s307_s1 = inlined_call_operand.hbm [shape: bf16[32,96], index: 1, kind: input, shape index: {}]   ;;  %s308_s2 = inlined_call_operand.hbm [shape: bf16[16,96], index: 2, kind: output, shape index: {}]  }
   0x1   :  { %8 = vsyncpa [#allocation6], 0 }
   0x2   :  { %9 = vsyncpa [#allocation4], 0  ;;  %s239_s9 = smov [#allocation2]   ;;  %s167_s13 = scalar_lea.hbm %s306_s0, 128 }
   0x3   :  { %s15_s10 = sshll.u32 %s239_s9, 4  ;;  %p168_p0 = scmp.ne.s32.totalorder %s306_s0, %s167_s13  ;;  %s16_s10 = int_to_ptr.vmem [resolvable:$true] %s15_s10 }
   0x4   :  { %p171_p1 = scmp.lt.u32.totalorder %s167_s13, %s306_s0 }
   0x6   :  { %p173_p2 = pnand %p171_p1, %p168_p0 }
   0x8   :  { %176 = shalt.err (!%p173_p2)
}
   0x9   :  { %s177_s18 = scalar_lea.vmem %s16_s10, 128  ;;  %p182_p4 = scmp.lt.s32.totalorder %s16_s10, %s16_s10 }
   0xa   :  { %p178_p3 = scmp.ne.s32.totalorder %s16_s10, %s177_s18  ;;  %p183_p5 = scmp.lt.s32.totalorder %s177_s18, %s177_s18 }
   0xc   :  { %p184_p6 = por %p183_p5, %p182_p4 }
   0xe   :  { %p185_p7 = pnand %p184_p6, %p178_p3 }
  0x10   :  { %188 = shalt.err (!%p185_p7)
}
  0x11   :  { %s240_s19 = smov 64   ;;  %s241_s20 = smov 4  }
  0x12   :  { %21 = dma.hbm_to_vmem [thread:$0]  %s306_s0, 128, %s16_s10, [#allocation3], %s240_s19, %s240_s19, %s241_s20  }
  0x13   :  { %s242_s23 = smov [#allocation5]   ;;  %s189_s27 = scalar_lea.hbm %s307_s1, 256 }
  0x14   :  { %s27_s24 = sshll.u32 %s242_s23, 4  ;;  %p190_p8 = scmp.ne.s32.totalorder %s307_s1, %s189_s27  ;;  %s28_s24 = int_to_ptr.vmem [resolvable:$true] %s27_s24 }
  0x15   :  { %p193_p9 = scmp.lt.u32.totalorder %s189_s27, %s307_s1 }
  0x17   :  { %p195_p10 = pnand %p193_p9, %p190_p8 }
  0x19   :  { %198 = shalt.err (!%p195_p10)
}
  0x1a   :  { %s199_s4 = scalar_lea.vmem %s28_s24, 256  ;;  %p204_p12 = scmp.lt.s32.totalorder %s28_s24, %s28_s24 }
  0x1b   :  { %p200_p11 = scmp.ne.s32.totalorder %s28_s24, %s199_s4  ;;  %p205_p13 = scmp.lt.s32.totalorder %s199_s4, %s199_s4 }
  0x1d   :  { %p206_p0 = por %p205_p13, %p204_p12 }
  0x1f   :  { %p207_p1 = pnand %p206_p0, %p200_p11 }
  0x21   :  { %210 = shalt.err (!%p207_p1)
}
  0x22   :  { %33 = dma.hbm_to_vmem [thread:$0]  %s307_s1, 256, %s28_s24, [#allocation6], %s240_s19, %s240_s19, %s241_s20  }
  0x23   :  { %233 = dma.done.wait [#allocation3], 128  }
  0x24   :  { %234 = vsyncadd [#allocation3], 4294967168 }
  0x25   :  { %235 = dma.done.wait [#allocation6], 256  }
  0x26   :  { %236 = vsyncadd [#allocation6], 4294967040  ;;  %v243_v0 = vmov 0.0   ;;  %vm244_vm0 = vmmov 0   ;;  %v164_v1 = vld [vmem:[#allocation5] sm:$0xff]   ;;  %v165_v2 = vld [vmem:[#allocation5 + $0x8] sm:$0xff]  }
  0x27   :  { %149 = vmatprep.subr.bf16.mxu0 %v243_v0  ;;  %153 = vmatprep.mubr.msk.bf16.mxu0 %vm244_vm0, %v243_v0  ;;  %v166_v3 = vld [vmem:[#allocation2] sm:$0xff]   ;;  %vm64_vm1 = vcmask 261120   ;;  %vm117_vm2 = vcmask 781312   ;;  %s245_s6 = smov [#allocation7]  }
  0x28   :  { %150 = vmatpush3.bf16.msra.mxu0 %v164_v1  ;;  %s125_s1 = sshll.u32 %s245_s6, 4  ;;  %s126_s1 = int_to_ptr.vmem [resolvable:$true] %s125_s1 }
  0x29   :  { %151 = vmatprep.subr.bf16.mxu0 %v243_v0  ;;  %s211_s7 = scalar_lea.vmem %s126_s1, 128  ;;  %p216_p3 = scmp.lt.s32.totalorder %s126_s1, %s126_s1 }
  0x2a   :  { %p212_p2 = scmp.ne.s32.totalorder %s126_s1, %s211_s7  ;;  %p217_p4 = scmp.lt.s32.totalorder %s211_s7, %s211_s7 }
  0x2c   :  { %152 = vmatpush3.bf16.msra.mxu0 %v165_v2  ;;  %p218_p5 = por %p217_p4, %p216_p3 }
  0x2e   :  { %p219_p6 = pnand %p218_p5, %p212_p2 }
  0x2f   :  { %154 = vmatmul.mubr.msk.bf16.vlgmr.msra.gmra.mrb[0].mxu0 %vm64_vm1, %v166_v3 }
 0x102   :  { %v102_v4 = vpop.f32.mrb[0].mxu0 }
 0x103   :  { %v144_v5 = vpack.c.bf16 %v102_v4, %v102_v4  ;;  %v155_v6 = vpop.f32.mrb[1].mxu0 }
 0x104   :  { %v105_v7 = vpop.f32.mrb[2].mxu0 }
 0x105   :  { %v145_v8 = vpack.c.bf16 %v105_v7, %v105_v7  ;;  %v156_v9 = vpop.f32.mrb[3].mxu0  ;;  %118 = vst.msk [vmem:[#allocation7] sm:$0xf] %vm117_vm2, %v144_v5 }
 0x107   :  { %119 = vst.msk [vmem:[#allocation7 + $0x4] sm:$0xf] %vm117_vm2, %v145_v8 }
 0x108   :  { %222 = shalt.err (!%p219_p6)
}
 0x109   :  { %s223_s10 = scalar_lea.hbm %s308_s2, 128 }
 0x10a   :  { %p224_p7 = scmp.ne.s32.totalorder %s308_s2, %s223_s10  ;;  %p227_p8 = scmp.lt.u32.totalorder %s223_s10, %s308_s2 }
 0x10c   :  { %p229_p9 = pnand %p227_p8, %p224_p7 }
 0x10e   :  { %232 = shalt.err (!%p229_p9)
}
 0x10f   :  { %131 = dma.vmem_to_hbm [thread:$0]  %s126_s1, 128, %s308_s2, [#allocation4], %s240_s19, %s240_s19, %s241_s20  }
 0x110   :  { %237 = dma.done.wait [#allocation4], 128  }
 0x111   :  { %238 = vsyncadd [#allocation4], 4294967168 }
 0x112   :  { %135 = vsyncpa [#allocation3], 1 }
 0x113   :  { %136 = vsyncpa [#allocation6], 1 }
 0x114   :  { %137 = vsyncpa [#allocation4], 1 }

</bundles_post_ra>
